<compile_context>
chip_gen: v7x
topology: tpu7x:2x2x1
jax: 0.10.0
libtpu: 0.0.40
codegen_flags: <defaults>
</compile_context>

<pallas_src>
import functools

import jax
import jax.numpy as jnp
from jax.experimental import pallas as pl
from jax.experimental.pallas import tpu as pltpu


# ----------------------------------------------------------------------------
# Pallas kernel (fused): global average pool + both Gram matrices, Tb tasks/step.
#   support block (Tb, s, C, HW), query block (Tb, q, C, HW)
#   -> out block   (Tb, s+q, s) = [sup_p ; qry_p] @ sup_pᵀ
#      rows [:s]  = kernel_matrix (support · supportᵀ)
#      rows [s:]  = compatibility (query   · supportᵀ)
# Pooled features never touch HBM; only the tiny Grams are written out.
# ----------------------------------------------------------------------------
def _pool_gram_kernel(sup_ref, qry_ref, out_ref, *, gram_in_bf16):
    s = sup_ref.shape[1]
    hw = sup_ref.shape[3]
    inv_hw = 1.0 / float(hw)

    # Global average pool: HW (lane-axis) reduce, accumulated in f32.  The result lands
    # with C on lanes, feeding the MXU directly (this is the in-VMEM relayout that
    # replaces the old HBM transpose).  XLU work; kernel is HBM-bound so it is hidden.
    sup_p = jnp.sum(sup_ref[...].astype(jnp.float32), axis=-1) * inv_hw   # (Tb, s, C)
    qry_p = jnp.sum(qry_ref[...].astype(jnp.float32), axis=-1) * inv_hw   # (Tb, q, C)

    lhs = jnp.concatenate([sup_p, qry_p], axis=1)                         # (Tb, s+q, C)
    if gram_in_bf16:
        lhs = lhs.astype(jnp.bfloat16)   # MXU inputs bf16, accumulation stays f32
    rhs = lhs[:, :s, :]                                                   # (Tb, s, C)

    # Single batched MXU dot (one RHS stream, one output block).
    out_ref[...] = jax.lax.dot_general(
        lhs, rhs,
        dimension_numbers=(((2,), (2,)), ((0,), (0,))),
        preferred_element_type=jnp.float32)                               # (Tb, s+q, s)


def _vmem_limit_bytes():
    # ~3/4 of per-core VMEM: ~96 MiB on 128 MiB v5e/v6e, ~48 MiB on the 64 MiB v7x.
    try:
        cap = pltpu.get_tpu_info().vmem_capacity_bytes
    except Exception:
        cap = 64 * 1024 * 1024
    return max(32 * 1024 * 1024, min((cap * 3) // 4, 100 * 1024 * 1024))


def _pick_tasks_per_step(b, per_task_in_bytes, vmem_limit):
    """Largest task-batch per grid step that (a) keeps ~4x per-task bytes (double-
    buffered inputs + f32 pool temporaries) within the VMEM budget, (b) keeps the grid
    length >= 2 so megacore 'parallel' can split work, (c) stops growing once per-step
    DMA is large enough to approach the HBM roofline."""
    target_step_bytes = 4 * 1024 * 1024
    best = 1
    for tb in range(1, b + 1):
        if b % tb:
            continue
        if b >= 2 and (b // tb) < 2:
            continue
        if 4 * tb * per_task_in_bytes > vmem_limit:
            continue
        best = tb
        if tb * per_task_in_bytes >= target_step_bytes:
            break
    return best


def pooled_gram_and_compat(support_xf, query_xf, *, features_bf16=True,
                           gram_in_bf16=True):
    """support_xf (b,s,C,H,W), query_xf (b,q,C,H,W) -> (b,s,s) Gram, (b,q,s) compat."""
    b, s, c, h, w = support_xf.shape
    q = query_xf.shape[1]
    hw = h * w

    # Free, contiguous reshape (NO transpose / extra HBM pass).  bf16 cast halves HBM
    # traffic of this memory-bound stage.
    feat_dtype = jnp.bfloat16 if features_bf16 else support_xf.dtype
    sup = support_xf.reshape(b, s, c, hw).astype(feat_dtype)
    qry = query_xf.reshape(b, q, c, hw).astype(feat_dtype)

    itemsize = jnp.dtype(feat_dtype).itemsize
    per_task_in_bytes = (s + q) * c * hw * itemsize
    vmem_limit = _vmem_limit_bytes()
    tb = _pick_tasks_per_step(b, per_task_in_bytes, vmem_limit)
    # TODO(synk): if a single task's feature maps ever exceed the VMEM budget, add an
    #             HW grid axis with a VMEM accumulator for the pooled sums.

    kernel = functools.partial(_pool_gram_kernel, gram_in_bf16=gram_in_bf16)

    out = pl.pallas_call(
        kernel,
        out_shape=jax.ShapeDtypeStruct((b, s + q, s), jnp.float32),
        grid=(b // tb,),
        in_specs=[pl.BlockSpec((tb, s, c, hw), lambda t: (t, 0, 0, 0)),
                  pl.BlockSpec((tb, q, c, hw), lambda t: (t, 0, 0, 0))],
        out_specs=pl.BlockSpec((tb, s + q, s), lambda t: (t, 0, 0)),
        compiler_params=pltpu.CompilerParams(
            dimension_semantics=("parallel",),
            vmem_limit_bytes=vmem_limit),
    )(sup, qry)

    kernel_matrix = out[:, :s, :]      # (b, s, s)
    compatibility = out[:, s:, :]      # (b, q, s)
    return kernel_matrix, compatibility


# ----------------------------------------------------------------------------
# Structured qpth-style batched primal-dual interior-point solver (plain JAX).
#   min 0.5 xᵀQx + pᵀx   s.t.  x <= h (G = I),  Ax = 0 (A = I_s ⊗ 1_wᵀ)
#   with  Q = kron(K, I_w) + I = kron(K + I_s, I_w).
# Only an s x s Cholesky of (K + I) is needed for Q; the (s + s*w) Schur complement is
# factored once per iteration and reused for the affine + corrector solves.
# TODO(synk): qpth's best-iterate tracking / residual-based early stop omitted.
# ----------------------------------------------------------------------------
def _chol_solve(L, B):
    Y = jax.lax.linalg.triangular_solve(L, B, left_side=True, lower=True)
    return jax.lax.linalg.triangular_solve(L, Y, left_side=True, lower=True,
                                           transpose_a=True)


def _get_step(v, dv):
    a = jnp.where(dv < 0, -v / dv, jnp.full_like(v, 1e10))
    return jnp.min(a, axis=1)


def batched_kronecker(m1, m2):
    B, r1, c1 = m1.shape
    r2, c2 = m2.shape[1], m2.shape[2]
    return jnp.einsum('bij,bkl->bikjl', m1, m2).reshape(B, r1 * r2, c1 * c2)


def qp_solve_metaopt(K, p, h, w, max_iter=3):
    """K: (B,s,s) support Gram; p,h: (B, s*w); w = n_way. Returns x (B, s*w)."""
    nB, s, _ = K.shape
    m = s * w            # inequality count == variable count (G = I)
    e = s                # equality count
    eps = 1e-12
    dtype = p.dtype

    KpI = K.astype(dtype) + jnp.eye(s, dtype=dtype)[None]          # Q = kron(KpI, I_w)
    L_K = jnp.linalg.cholesky(KpI)                                 # s x s factor only
    eye_s = jnp.broadcast_to(jnp.eye(s, dtype=dtype), (nB, s, s))
    M = _chol_solve(L_K, eye_s)                                    # (K+I)^{-1}

    def Q_apply(v):              # kron(K+I, I_w) @ v
        vr = v.reshape(nB, s, w)
        return jnp.einsum('bij,bjk->bik', KpI, vr).reshape(nB, m)

    def Qinv_apply(v):           # kron((K+I)^{-1}, I_w) @ v via the s x s factor
        vr = v.reshape(nB, s, w)
        y = jax.lax.linalg.triangular_solve(L_K, vr, left_side=True, lower=True)
        x = jax.lax.linalg.triangular_solve(L_K, y, left_side=True, lower=True,
                                            transpose_a=True)
        return x.reshape(nB, m)

    def A_apply(v):              # A v : sum each length-w block     (B,m) -> (B,s)
        return jnp.sum(v.reshape(nB, s, w), axis=2)

    def AT_apply(y):             # Aᵀ y : repeat each entry w times  (B,s) -> (B,m)
        return jnp.repeat(y, w, axis=1)

    # d-independent Schur complement blocks (G = I, Q^{-1} = kron(M, I_w)):
    #   [[A Q⁻¹ Aᵀ, A Q⁻¹], [Q⁻¹ Aᵀ, Q⁻¹]] = [[w·M, M⊗1ᵀ], [M⊗1, kron(M, I_w)]]
    S_tl = float(w) * M                                            # (B, s, s)
    S_tr = jnp.repeat(M, w, axis=2)                                # (B, s, m)
    S_bl = jnp.repeat(M, w, axis=1)                                # (B, m, s)
    S_br = batched_kronecker(M, jnp.broadcast_to(jnp.eye(w, dtype=dtype), (nB, w, w)))
    S_base = jnp.concatenate(
        [jnp.concatenate([S_tl, S_tr], axis=2),
         jnp.concatenate([S_bl, S_br], axis=2)], axis=1)           # (B, e+m, e+m)
    diag_idx = jnp.arange(m)

    def factor_S(d):
        S = S_base.at[:, e + diag_idx, e + diag_idx].add(1.0 / d)
        return jnp.linalg.cholesky(S)

    def solve_kkt(L_S, d, rx, rs, rz, ry):
        invQ_rx = Qinv_apply(rx)
        h1 = A_apply(invQ_rx) - ry
        h2 = invQ_rx + rs / d - rz                 # G = I
        hv = jnp.concatenate([h1, h2], axis=1)
        wv = -_chol_solve(L_S, hv[..., None])[..., 0]
        wy, wz = wv[:, :e], wv[:, e:]
        g1 = -rx - wz - AT_apply(wy)               # Gᵀ wz = wz
        g2 = -rs - wz
        dx = Qinv_apply(g1)
        ds = g2 / d
        return dx, ds, wz, wy

    b_eq = jnp.zeros((nB, e), dtype)

    # --- initialization (d = 1) ----------------------------------------------
    d0 = jnp.ones((nB, m), dtype)
    L_S0 = factor_S(d0)
    x, sl, z, y = solve_kkt(L_S0, d0, p, jnp.zeros_like(h), -h, -b_eq)

    Ms_ = jnp.min(sl, axis=1, keepdims=True)
    sl = jnp.where(Ms_ < 0, sl - Ms_ + 1.0, sl)
    Mz_ = jnp.min(z, axis=1, keepdims=True)
    z = jnp.where(Mz_ < 0, z - Mz_ + 1.0, z)

    # --- interior-point iterations -------------------------------------------
    for _ in range(max_iter):
        rx = AT_apply(y) + z + Q_apply(x) + p      # Aᵀy + Gᵀz + Qx + p  (G = I)
        rs = z
        rz = x + sl - h                            # Gx + s - h          (G = I)
        ry = A_apply(x) - b_eq
        sz = jnp.sum(sl * z, axis=1)
        mu = jnp.abs(sz / m)

        d = z / sl
        L_S = factor_S(d)                          # one factorization per iteration
        dx_a, ds_a, dz_a, dy_a = solve_kkt(L_S, d, rx, rs, rz, ry)

        alpha = jnp.minimum(jnp.minimum(_get_step(z, dz_a), _get_step(sl, ds_a)), 1.0)
        a_ = alpha[:, None]
        t1 = sl + a_ * ds_a
        t2 = z + a_ * dz_a
        sig = (jnp.sum(t1 * t2, axis=1) / (sz + eps)) ** 3

        rs_c = ((-mu * sig)[:, None] + ds_a * dz_a) / sl
        dx_c, ds_c, dz_c, dy_c = solve_kkt(
            L_S, d, jnp.zeros_like(x), rs_c, jnp.zeros_like(sl), jnp.zeros_like(b_eq))

        dx, ds, dz, dy = dx_a + dx_c, ds_a + ds_c, dz_a + dz_c, dy_a + dy_c
        alpha = jnp.minimum(0.999 * jnp.minimum(_get_step(z, dz), _get_step(sl, ds)), 1.0)
        a_ = alpha[:, None]
        x = x + a_ * dx
        sl = sl + a_ * ds
        z = z + a_ * dz
        y = y + a_ * dy
    return x


# ----------------------------------------------------------------------------
# MetaOptNet forward (eval-mode path of the reference module)
# ----------------------------------------------------------------------------
class MetaOptNetPallas:
    def __init__(self, in_channels, features_bf16=True, gram_in_bf16=True):
        self.C_reg = 0.1
        self.maxIter = 3
        # nn.Parameter(torch.FloatTensor([1.0])) -- deterministic init
        self.scale = jnp.ones((1,), jnp.float32)
        # bf16 feature HBM traffic + bf16 MXU Gram inputs (f32 accumulation everywhere).
        # Set both to False to restore the exact f32 reference path.
        self.features_bf16 = features_bf16
        self.gram_in_bf16 = gram_in_bf16

    def __call__(self, support_xf, support_y, query_xf, query_y, n_way, k_shot):
        b, q, c, hh, ww = query_xf.shape
        s = support_xf.shape[1]
        assert s == n_way * k_shot

        # Fused Pallas stage: pool(support) + pool(query) + both Grams.
        kernel_matrix, compatibility = pooled_gram_and_compat(
            support_xf, query_xf,
            features_bf16=self.features_bf16, gram_in_bf16=self.gram_in_bf16)
        # kernel_matrix: (b, s, s)    compatibility: (b, q, s)

        onehot = jax.nn.one_hot(support_y.reshape(b * s), n_way, dtype=jnp.float32)
        onehot = onehot.reshape(b, s * n_way)

        p = -1.0 * onehot                      # linear term
        h = self.C_reg * onehot                # inequality rhs (G = I)
        # G (= I), A (= I_s ⊗ 1ᵀ), block_kernel are never materialized densely;
        # qp_solve_metaopt exploits their structure.
        qp_sol = qp_solve_metaopt(kernel_matrix, p, h, n_way, max_iter=self.maxIter)
        qp_sol = qp_sol.reshape(b, s, n_way)

        # Logits: tiny batched (q,s)x(s,w) contraction + learnable scale.  Done in XLA;
        # a pallas_call here is pure dispatch overhead at these sizes (perf review).
        logits = self.scale[0] * jnp.einsum('bqs,bsw->bqw', compatibility, qp_sol)
        logits = logits.reshape(-1, n_way)

        # eval-mode branch of the reference module: per-query 0/1 rewards
        # TODO(synk): training branch (nn.CrossEntropyLoss) not implemented here.
        predict = jnp.argmax(logits, axis=1)
        rewards = (predict == query_y.reshape(-1)).astype(jnp.int32)
        return logits, rewards


if __name__ == "__main__":
    key = jax.random.PRNGKey(0)
    b, n_way, k_shot, n_query, c, hh, ww = 2, 5, 1, 6, 16, 8, 8
    s = n_way * k_shot

    k1, k2, k3 = jax.random.split(key, 3)
    support_xf = jax.random.normal(k1, (b, s, c, hh, ww), jnp.float32)
    query_xf = jax.random.normal(k2, (b, n_query, c, hh, ww), jnp.float32)
    support_y = jnp.broadcast_to(
        jnp.tile(jnp.arange(n_way, dtype=jnp.int32), k_shot), (b, s))
    query_y = jax.random.randint(k3, (b, n_query), 0, n_way, dtype=jnp.int32)

    model = MetaOptNetPallas(c)
    logits, rewards = model(support_xf, support_y, query_xf, query_y, n_way, k_shot)
    jax.block_until_ready(rewards)
    assert logits.shape == (b * n_query, n_way)
    assert rewards.shape == (b * n_query,)
    print("KERNEL_OK")
</pallas_src>

<mosaic_0001>
module attributes {stable_mosaic.version = 11 : i64} {
  func.func @_pool_gram_kernel(%arg0: i32, %arg1: memref<1x5x16x64xbf16, #tpu.memory_space<vmem>>, %arg2: memref<1x6x16x64xbf16, #tpu.memory_space<vmem>>, %arg3: memref<1x11x5xf32, #tpu.memory_space<vmem>>) attributes {dimension_semantics = [#tpu.dimension_semantics<parallel>], iteration_bounds = array<i64: 2>, scalar_prefetch = 0 : i64, scratch_operands = 0 : i64, tpu.core_type = #tpu.core_type<tc>, window_params = [{transform_indices = @transform_0, window_bounds = array<i64: 1, 5, 16, 64>}, {transform_indices = @transform_1, window_bounds = array<i64: 1, 6, 16, 64>}, {transform_indices = @transform_2, window_bounds = array<i64: 1, 11, 5>}]} {
    %c0 = arith.constant 0 : index
    %c0_0 = arith.constant 0 : index
    %c0_1 = arith.constant 0 : index
    %c0_2 = arith.constant 0 : index
    %0 = vector.load %arg1[%c0, %c0_0, %c0_1, %c0_2] : memref<1x5x16x64xbf16, #tpu.memory_space<vmem>>, vector<1x5x16x64xbf16>
    %1 = arith.extf %0 : vector<1x5x16x64xbf16> to vector<1x5x16x64xf32>
    %cst = arith.constant dense<0.000000e+00> : vector<1x5x16xf32>
    %2 = vector.multi_reduction <add>, %1, %cst [3] : vector<1x5x16x64xf32> to vector<1x5x16xf32>
    %cst_3 = arith.constant 1.562500e-02 : f32
    %3 = vector.broadcast %cst_3 : f32 to vector<1x5x16xf32>
    %4 = arith.mulf %2, %3 : vector<1x5x16xf32>
    %c0_4 = arith.constant 0 : index
    %c0_5 = arith.constant 0 : index
    %c0_6 = arith.constant 0 : index
    %c0_7 = arith.constant 0 : index
    %5 = vector.load %arg2[%c0_4, %c0_5, %c0_6, %c0_7] : memref<1x6x16x64xbf16, #tpu.memory_space<vmem>>, vector<1x6x16x64xbf16>
    %6 = arith.extf %5 : vector<1x6x16x64xbf16> to vector<1x6x16x64xf32>
    %cst_8 = arith.constant dense<0.000000e+00> : vector<1x6x16xf32>
    %7 = vector.multi_reduction <add>, %6, %cst_8 [3] : vector<1x6x16x64xf32> to vector<1x6x16xf32>
    %cst_9 = arith.constant 1.562500e-02 : f32
    %8 = vector.broadcast %cst_9 : f32 to vector<1x6x16xf32>
    %9 = arith.mulf %7, %8 : vector<1x6x16xf32>
    %10 = tpu.concatenate %4, %9 in 1 : vector<1x5x16xf32>, vector<1x6x16xf32> -> vector<1x11x16xf32>
    %11 = arith.truncf %10 : vector<1x11x16xf32> to vector<1x11x16xbf16>
    %12 = vector.extract_strided_slice %11 {offsets = [0, 0, 0], sizes = [1, 5, 16], strides = [1, 1, 1]} : vector<1x11x16xbf16> to vector<1x5x16xbf16>
    %cst_10 = arith.constant dense<0.000000e+00> : vector<1x11x5xf32>
    %13 = tpu.matmul %11, %12, %cst_10 {dimension_numbers = #tpu.dot_dimension_numbers<[2], [2], [1], [1], [0, 0, 0, 1, 1, 1], [0], [0]>} : vector<1x11x16xbf16>, vector<1x5x16xbf16>, vector<1x11x5xf32> -> vector<1x11x5xf32>
    %c0_11 = arith.constant 0 : index
    %c0_12 = arith.constant 0 : index
    %c0_13 = arith.constant 0 : index
    %14 = vector.load %arg3[%c0_11, %c0_12, %c0_13] : memref<1x11x5xf32, #tpu.memory_space<vmem>>, vector<1x11x5xf32>
    tpu.vector_store %arg3[%c0_11, %c0_12, %c0_13], %13 {strides = array<i32>} : memref<1x11x5xf32, #tpu.memory_space<vmem>>, vector<1x11x5xf32>,
    return
  }
  func.func @transform_0(%arg0: i32) -> (i32, i32, i32, i32) {
    %c0_i32 = arith.constant 0 : i32
    %c0_i32_0 = arith.constant 0 : i32
    %c0_i32_1 = arith.constant 0 : i32
    %c0_i32_2 = arith.constant 0 : i32
    return %arg0, %c0_i32, %c0_i32_0, %c0_i32_1 : i32, i32, i32, i32
  }
  func.func @transform_1(%arg0: i32) -> (i32, i32, i32, i32) {
    %c0_i32 = arith.constant 0 : i32
    %c0_i32_0 = arith.constant 0 : i32
    %c0_i32_1 = arith.constant 0 : i32
    %c0_i32_2 = arith.constant 0 : i32
    return %arg0, %c0_i32, %c0_i32_0, %c0_i32_1 : i32, i32, i32, i32
  }
  func.func @transform_2(%arg0: i32) -> (i32, i32, i32) {
    %c0_i32 = arith.constant 0 : i32
    %c0_i32_0 = arith.constant 0 : i32
    %c0_i32_1 = arith.constant 0 : i32
    return %arg0, %c0_i32, %c0_i32_0 : i32, i32, i32
  }
}

</mosaic_0001>

<bundles_post_ra>
// kernel: tpu_custom_call.1
= control target key start
LH: loop header
LB: loop body
LE: loop exit
PB: predicated region body
PF: predicated region fallthrough
CT: control target
= control target key end

     0   :  { %7 = vsyncpa [#allocation3], 0  ;;  %s1115_s0 = inlined_call_operand.hbm [shape: bf16[2,5,16,64], index: 0, kind: input, shape index: {}]   ;;  %s1116_s1 = inlined_call_operand.hbm [shape: bf16[2,6,16,64], index: 1, kind: input, shape index: {}]   ;;  %s1117_s2 = inlined_call_operand.vmem [shape: f32[2,11,5], index: 2, kind: output, shape index: {}]  }
   0x1   :  { %9 = vsyncpa [#allocation3 + $0x1], 0 }
   0x2   :  { %10 = vsyncpa [#allocation5], 0 }
   0x3   :  { %12 = vsyncpa [#allocation5 + $0x1], 0  ;;  %s870_s9 = smov 0   ;;  %s872_s10 = smov 0  }
   0x4   :  { %s874_s11 = smov 0   ;;  %s876_s12 = smov 0  }
   0x5 LB: > { %s889_s13 = sadd.s32 4294967295, %s847_s12   ;;  %s892_s14 = sadd.s32 1, %s847_s12   ;;  %s847_s12 = sphi %s876_s12, %s1127_s12   ;;  %s843_s11 = sphi %s874_s11, %s1126_s11   ;;  %s839_s10 = sphi %s872_s10, %s1125_s10   ;;  %s835_s9 = sphi %s870_s9, %s1124_s9  }
   0x6   : > { %s22_s15 = ssub.s32 %s847_s12, %s892_s14  ;;  %s25_s16 = sadd.s32 1, %s843_s11 }
   0x7   : > { %p23_p0 = scmp.eq.s32.totalorder %s22_s15, 0  ;;  %p32_p1 = scmp.ne.s32.totalorder %s843_s11, %s839_s10 }
   0x8   : > { %p33_p2 = scmp.eq.s32.totalorder %s847_s12, 0  ;;  %p38_p3 = scmp.ne.s32.totalorder %s839_s10, %s835_s9 }
   0x9   : > { %s902_s17 = scalar_select %p23_p0, %s843_s11, %s25_s16  }
   0xa   : > { %p34_p4 = por %p33_p2, %p32_p1  ;;  %p39_p5 = scmp.eq.s32.totalorder %s889_s13, 0 }
   0xb   : > { %p712_p6 = scmp.lt.s32.totalorder %s847_s12, 2  ;;  %s911_s19 = sand.u32 1, %s843_s11  }
   0xc   : > { %p906_p7 = por %p39_p5, %p38_p3  ;;  %s695_s20 = smul.u32 40, %s911_s19 }
   0xd   : > { %s696_s21 = smul.u32 640, %s847_s12  ;;  %p915_p8 = pnand %p712_p6, %p34_p4 }
   0xe   : > { %s1119_s18 = scalar_select %p906_p7, 1, 0 }
   0xf   : > { %s922_s25 = scalar_lea.hbm %s1115_s0, %s696_s21  ;;  %s118_s26 = scalar_lea.vmem [#allocation2], %s695_s20 }
  0x10   : > { %s125_s27 = sshll.u32 %s118_s26, 4  ;;  %s115_s28 = scalar_lea.sflag [#allocation3], %s911_s19  ;;  %s924_s27 = int_to_ptr.vmem [resolvable:$true] %s125_s27 }
  0x11   : > { %s749_s29 = scalar_lea.hbm %s922_s25, 640  ;;  %p751_p11 = pneg %p915_p8 }
  0x12   : > { %p750_p10 = scmp.ne.s32.totalorder %s922_s25, %s749_s29  ;;  %s754_s4 = scalar_lea.hbm %s1115_s0, 1280 }
  0x13   : > { %p755_p0 = scmp.lt.u32.totalorder %s922_s25, %s1115_s0  ;;  %p756_p1 = scmp.lt.u32.totalorder %s754_s4, %s749_s29 }
  0x14   : > { %p752_p12 = pnand %p751_p11, %p750_p10  ;;  %p758_p3 = scmp.lt.u32.totalorder %s749_s29, %s922_s25 }
  0x15   : > { %p757_p2 = por %p756_p1, %p755_p0 }
  0x16   : > { %p753_p13 = pneg %p752_p12 }
  0x17   : > { %p759_p4 = por %p758_p3, %p757_p2 }
  0x19   : > { %p760_p5 = pnand %p759_p4, %p753_p13 }
  0x1b   : > { %763 = shalt.err (!%p760_p5)
}
  0x1c   : > { %s764_s7 = scalar_lea.vmem %s924_s27, 640  ;;  %s849_s8 = smov [#allocation2]  }
  0x1d   : > { %p765_p6 = scmp.ne.s32.totalorder %s924_s27, %s764_s7  ;;  %s769_s9 = sshll.u32 %s849_s8, 4  ;;  %s770_s9 = int_to_ptr.vmem [resolvable:$false] %s769_s9 }
  0x1e   : > { %s771_s15 = scalar_lea.vmem %s770_s9, 1280  ;;  %p772_p9 = scmp.lt.s32.totalorder %s924_s27, %s770_s9 }
  0x1f   : > { %p767_p10 = pnand %p765_p6, %p751_p11  ;;  %p773_p0 = scmp.lt.s32.totalorder %s771_s15, %s764_s7 }
  0x21   : > { %p768_p12 = pneg %p767_p10  ;;  %p774_p1 = por %p773_p0, %p772_p9 }
  0x23   : > { %p775_p2 = pnand %p774_p1, %p768_p12 }
  0x25   : > { %778 = shalt.err (!%p775_p2)
}
  0x26   : > { %s850_s16 = smov 64   ;;  %s851_s20 = smov 4  }
  0x27   : > { %708 = dma.hbm_to_vmem [thread:$0]  (!%p915_p8), %s922_s25, 640, %s924_s27, %s115_s28, %s850_s16, %s850_s16, %s851_s20  }
  0x28   : > { %p154_p9 = scmp.lt.s32.totalorder %s847_s12, 3  ;;  %s697_s21 = smul.u32 48, %s911_s19 }
  0x29   : > { %p1121_p13 = scmp.ge.s32.totalorder %s847_s12, 1  ;;  %s698_s24 = smul.u32 768, %s847_s12 }
  0x2a   : > { %s139_s3 = scalar_lea.vmem [#allocation4], %s697_s21  ;;  %s136_s25 = scalar_lea.sflag [#allocation5], %s911_s19 }
  0x2b   : > { %p962_p3 = pnand %p1121_p13, %p154_p9  ;;  %s970_s30 = scalar_lea.hbm %s1116_s1, %s698_s24 }
  0x2c   : > { %s146_s4 = sshll.u32 %s139_s3, 4  ;;  %s779_s27 = scalar_lea.hbm %s970_s30, 768  ;;  %s972_s4 = int_to_ptr.vmem [resolvable:$true] %s146_s4 }
  0x2d   : > { %p780_p4 = scmp.ne.s32.totalorder %s970_s30, %s779_s27  ;;  %s784_s5 = scalar_lea.hbm %s1116_s1, 1536 }
  0x2e   : > { %p785_p10 = scmp.lt.u32.totalorder %s970_s30, %s1116_s1  ;;  %p786_p12 = scmp.lt.u32.totalorder %s784_s5, %s779_s27 }
  0x2f   : > { %p782_p5 = pnand %p780_p4, %p751_p11  ;;  %p788_p1 = scmp.lt.u32.totalorder %s779_s27, %s970_s30 }
  0x30   : > { %p787_p0 = por %p786_p12, %p785_p10 }
  0x31   : > { %p783_p6 = pneg %p782_p5 }
  0x32   : > { %p789_p2 = por %p788_p1, %p787_p0 }
  0x34   : > { %p790_p9 = pnand %p789_p2, %p783_p6 }
  0x36   : > { %793 = shalt.err (!%p790_p9)
}
  0x37   : > { %s794_s8 = scalar_lea.vmem %s972_s4, 768  ;;  %s852_s9 = smov [#allocation4]  }
  0x38   : > { %p795_p13 = scmp.ne.s32.totalorder %s972_s4, %s794_s8  ;;  %s799_s15 = sshll.u32 %s852_s9, 4  ;;  %s800_s15 = int_to_ptr.vmem [resolvable:$false] %s799_s15 }
  0x39   : > { %s801_s21 = scalar_lea.vmem %s800_s15, 1536  ;;  %p802_p7 = scmp.lt.s32.totalorder %s972_s4, %s800_s15 }
  0x3a   : > { %p797_p4 = pnand %p795_p13, %p751_p11  ;;  %p803_p10 = scmp.lt.s32.totalorder %s801_s21, %s794_s8 }
  0x3c   : > { %p798_p5 = pneg %p797_p4  ;;  %p804_p12 = por %p803_p10, %p802_p7 }
  0x3e   : > { %p805_p0 = pnand %p804_p12, %p798_p5 }
  0x40   : > { %808 = shalt.err (!%p805_p0)
}
  0x41   : > { %711 = dma.hbm_to_vmem [thread:$0]  (!%p915_p8), %s970_s30, 768, %s972_s4, %s136_s25, %s850_s16, %s850_s16, %s851_s20  }
  0x42   : > { %158 = sbr.rel (%p962_p3) target bundleno = 495 (0x1ef), region = 28  ;;  %s160_s24 = sand.u32 (!%p962_p3), 1, %s839_s10  }
  0x43   : > { %s699_s26 = smul.u32 (!%p962_p3), 40, %s160_s24  ;;  %s161_s29 = scalar_lea.sflag (!%p962_p3), [#allocation3], %s160_s24 }
  0x44   : > { %p1123_p7 = scmp.ne.s32.totalorder (!%p962_p3), %s1119_s18, 0 }
  0x45   : > { %s1006_s3 = scalar_lea.vmem (!%p962_p3), [#allocation2], %s699_s26 }
  0x49   : > { %826 = dma.done.wait (%p1123_p7), %s161_s29, 640  }
  0x4a   : > { %828 = vsyncadd (%p1123_p7), %s161_s29, 4294966656  ;;  %s700_s19 = smul.u32 48, %s160_s24  ;;  %s170_s22 = scalar_lea.sflag [#allocation5], %s160_s24 }
  0x4c   : > { %s1012_s27 = scalar_lea.vmem [#allocation4], %s700_s19 }
  0x4d   : > { %830 = dma.done.wait (%p1123_p7), %s170_s22, 768  }
  0x4e   : > { %832 = vsyncadd (%p1123_p7), %s170_s22, 4294966528  ;;  %v678_v0 = vld [vmem:[%s1006_s3 + $0x8] sm:$0xff]   ;;  %vm225_vm0 = vcmask 523264   ;;  %v635_v1 = vld [vmem:[%s1006_s3] sm:$0xff]   ;;  %v853_v55 = vmov 0.0   ;;  %vm854_vm1 = vmmov 0  }
  0x4f   : > { %v640_v2 = vunpack.c.l.bf16 %v678_v0  ;;  %v636_v3 = vunpack.c.l.bf16 %v635_v1  ;;  %v641_v4 = vunpack.c.h.bf16 %v678_v0  ;;  %v637_v5 = vunpack.c.h.bf16 %v635_v1  ;;  %v679_v6 = vld [vmem:[%s1006_s3 + $0x10] sm:$0xff]   ;;  %v680_v13 = vld [vmem:[%s1006_s3 + $0x18] sm:$0xff]   ;;  %v681_v28 = vld [vmem:[%s1006_s3 + $0x20] sm:$0xff]   ;;  %689 = vmatprep.subr.bf16.mxu0 %v853_v55  ;;  %691 = vmatprep.mubr.msk.bf16.mxu0 %vm854_vm1, %v853_v55  ;;  %p199_p8 = scmp.lt.s32.totalorder %s889_s13, 1 }
  0x50   : > { %v645_v11 = vunpack.c.h.bf16 %v679_v6  ;;  %v644_v12 = vunpack.c.l.bf16 %v679_v6  ;;  %v649_v16 = vunpack.c.h.bf16 %v680_v13  ;;  %v648_v17 = vunpack.c.l.bf16 %v680_v13  ;;  %v655_v18 = vld [vmem:[%s1012_s27] sm:$0xff]   ;;  %v682_v23 = vld [vmem:[%s1012_s27 + $0x8] sm:$0xff]   ;;  %v683_v33 = vld [vmem:[%s1012_s27 + $0x10] sm:$0xff]  }
  0x51   : > { %v232_v7 = vsel %vm225_vm0, %v640_v2, 0.0  ;;  %v226_v8 = vsel %vm225_vm0, %v636_v3, 0.0  ;;  %v235_v9 = vsel %vm225_vm0, %v641_v4, 0.0  ;;  %v229_v10 = vsel %vm225_vm0, %v637_v5, 0.0  ;;  %v684_v38 = vld [vmem:[%s1012_s27 + $0x18] sm:$0xff]   ;;  %v685_v43 = vld [vmem:[%s1012_s27 + $0x20] sm:$0xff]  }
  0x52   : > { %233 = vadd.xlane.f32.xlu1 %v232_v7  ;;  %227 = vadd.xlane.f32.xlu0 %v226_v8  ;;  %v241_v14 = vsel %vm225_vm0, %v645_v11, 0.0  ;;  %v238_v15 = vsel %vm225_vm0, %v644_v12, 0.0  ;;  %v247_v19 = vsel %vm225_vm0, %v649_v16, 0.0  ;;  %v244_v20 = vsel %vm225_vm0, %v648_v17, 0.0  ;;  %v686_v48 = vld [vmem:[%s1012_s27 + $0x28] sm:$0xff]   ;;  %s1129_s13 = smov (!%p199_p8, %s889_s13), 1 }
  0x53   : > { %v657_v21 = vunpack.c.h.bf16 %v655_v18  ;;  %v656_v22 = vunpack.c.l.bf16 %v655_v18  ;;  %v661_v26 = vunpack.c.h.bf16 %v682_v23  ;;  %v660_v27 = vunpack.c.l.bf16 %v682_v23  ;;  %s633_s18 = sshll.u32 %s1129_s13, 4 }
  0x54   : > { %v653_v31 = vunpack.c.h.bf16 %v681_v28  ;;  %v652_v32 = vunpack.c.l.bf16 %v681_v28  ;;  %v665_v36 = vunpack.c.h.bf16 %v683_v33  ;;  %v664_v37 = vunpack.c.l.bf16 %v683_v33  ;;  %s203_s23 = scalar_lea.vmem %s1117_s2, %s633_s18 }
  0x55   : > { %v293_v24 = vsel %vm225_vm0, %v657_v21, 0.0  ;;  %v290_v25 = vsel %vm225_vm0, %v656_v22, 0.0  ;;  %v299_v29 = vsel %vm225_vm0, %v661_v26, 0.0  ;;  %v296_v30 = vsel %vm225_vm0, %v660_v27, 0.0 }
  0x56   : > { %236 = vadd.xlane.f32.xlu1 %v235_v9  ;;  %230 = vadd.xlane.f32.xlu0 %v229_v10  ;;  %v253_v34 = vsel %vm225_vm0, %v653_v31, 0.0  ;;  %v250_v35 = vsel %vm225_vm0, %v652_v32, 0.0  ;;  %v305_v39 = vsel %vm225_vm0, %v665_v36, 0.0  ;;  %v302_v40 = vsel %vm225_vm0, %v664_v37, 0.0 }
  0x57   : > { %v669_v41 = vunpack.c.h.bf16 %v684_v38  ;;  %v668_v42 = vunpack.c.l.bf16 %v684_v38  ;;  %v673_v46 = vunpack.c.h.bf16 %v685_v43  ;;  %v672_v47 = vunpack.c.l.bf16 %v685_v43 }
  0x58   : > { %v677_v51 = vunpack.c.h.bf16 %v686_v48  ;;  %v676_v52 = vunpack.c.l.bf16 %v686_v48  ;;  %v348_v2 = vlaneseq  ;;  %vm359_vm2 = vcmask 130112  }
  0x59   : > { %v311_v44 = vsel %vm225_vm0, %v669_v41, 0.0  ;;  %v308_v45 = vsel %vm225_vm0, %v668_v42, 0.0  ;;  %v317_v49 = vsel %vm225_vm0, %v673_v46, 0.0  ;;  %v314_v50 = vsel %vm225_vm0, %v672_v47, 0.0 }
  0x5a   : > { %242 = vadd.xlane.f32.xlu1 %v241_v14  ;;  %239 = vadd.xlane.f32.xlu0 %v238_v15  ;;  %v323_v53 = vsel %vm225_vm0, %v677_v51, 0.0  ;;  %v320_v54 = vsel %vm225_vm0, %v676_v52, 0.0  ;;  %v349_v5 = vand.u32 127, %v348_v2  ;;  %v351_v6 = vshrl.u32 %v348_v2, 7 }
  0x5b   : > { %vm397_vm3 = vcmask 1041409   ;;  %vm472_vm4 = vcmask 1046534   ;;  %vm399_vm5 = vcmask 1042434   ;;  %vm474_vm6 = vcmask 1047559  }
  0x5c   : > { %v354_v9 = vadd.s32 4294967288, %v349_v5  ;;  %v1051_v10 = vsub.s32 %v349_v5, %v351_v6  ;;  %vm401_vm7 = vcmask 1043459   ;;  %vm403_vm8 = vcmask 1044484  }
  0x5d   : > { %vm480_vm9 = vcmask 1044480   ;;  %vm483_vm10 = vcmask 130048   ;;  %vm528_vm11 = vcmask 39936   ;;  %vm530_vm12 = vcmask 34816  }
  0x5e   : > { %248 = vadd.xlane.f32.xlu1 %v247_v19  ;;  %245 = vadd.xlane.f32.xlu0 %v244_v20  ;;  %v1053_v15 = vsub.s32 %v354_v9, %v351_v6 }
  0x62   : > { %294 = vadd.xlane.f32.xlu1 %v293_v24  ;;  %291 = vadd.xlane.f32.xlu0 %v290_v25 }
  0x66   : > { %300 = vadd.xlane.f32.xlu1 %v299_v29  ;;  %297 = vadd.xlane.f32.xlu0 %v296_v30 }
  0x6a   : > { %254 = vadd.xlane.f32.xlu1 %v253_v34  ;;  %251 = vadd.xlane.f32.xlu0 %v250_v35 }
  0x6e   : > { %306 = vadd.xlane.f32.xlu1 %v305_v39  ;;  %303 = vadd.xlane.f32.xlu0 %v302_v40 }
  0x72   : > { %312 = vadd.xlane.f32.xlu1 %v311_v44  ;;  %309 = vadd.xlane.f32.xlu0 %v308_v45 }
  0x76   : > { %318 = vadd.xlane.f32.xlu1 %v317_v49  ;;  %315 = vadd.xlane.f32.xlu0 %v314_v50 }
  0x7a   : > { %324 = vadd.xlane.f32.xlu1 %v323_v53  ;;  %321 = vadd.xlane.f32.xlu0 %v320_v54 }
  0xdf   : > { %v234_v56 = vpop.xlane.xlu1 %233  ;;  %v228_v57 = vpop.xlane.xlu0 %227 }
  0xe0   : > { %v258_v11 = vmul.f32 0.015625, %v234_v56  ;;  %v256_v12 = vmul.f32 0.015625, %v228_v57 }
  0xe2   : > { %v364_v24 = vrot.slane %v258_v11, %v1051_v10  ;;  %v353_v25 = vrot.slane %v256_v12, %v1051_v10 }
  0xe3   : > { %v237_v58 = vpop.xlane.xlu1 %236  ;;  %v231_v59 = vpop.xlane.xlu0 %230 }
  0xe4   : > { %v259_v16 = vmul.f32 0.015625, %v237_v58  ;;  %v257_v17 = vmul.f32 0.015625, %v231_v59 }
  0xe6   : > { %v368_v30 = vrot.slane %v259_v16, %v1053_v15  ;;  %v358_v31 = vrot.slane %v257_v17, %v1053_v15 }
  0xe7   : > { %v243_v60 = vpop.xlane.xlu1 %242  ;;  %v240_v61 = vpop.xlane.xlu0 %239 }
  0xe8   : > { %v261_v18 = vmul.f32 0.015625, %v243_v60  ;;  %v260_v19 = vmul.f32 0.015625, %v240_v61  ;;  %v369_v52 = vsel %vm359_vm2, %v368_v30, %v364_v24  ;;  %v360_v55 = vsel %vm359_vm2, %v358_v31, %v353_v25 }
  0xea   : > { %v377_v34 = vrot.slane %v261_v18, %v1053_v15  ;;  %v373_v35 = vrot.slane %v260_v19, %v1051_v10 }
  0xeb   : > { %v249_v62 = vpop.xlane.xlu1 %248  ;;  %v246_v63 = vpop.xlane.xlu0 %245 }
  0xec   : > { %v263_v20 = vmul.f32 0.015625, %v249_v62  ;;  %v262_v21 = vmul.f32 0.015625, %v246_v63  ;;  %v378_v59 = vsel %vm359_vm2, %v377_v34, %v373_v35 }
  0xee   : > { %v386_v38 = vrot.slane %v263_v20, %v1053_v15  ;;  %v382_v39 = vrot.slane %v262_v21, %v1051_v10 }
  0xef   : > { %v295_v0 = vpop.xlane.xlu1 %294  ;;  %v292_v1 = vpop.xlane.xlu0 %291 }
  0xf0   : > { %v327_v32 = vmul.f32 0.015625, %v295_v0  ;;  %v326_v33 = vmul.f32 0.015625, %v292_v1  ;;  %v387_v1 = vsel %vm359_vm2, %v386_v38, %v382_v39 }
  0xf2   : > { %v425_v48 = vrot.slane %v327_v32, %v1053_v15  ;;  %v421_v49 = vrot.slane %v326_v33, %v1051_v10 }
  0xf3   : > { %v301_v3 = vpop.xlane.xlu1 %300  ;;  %v298_v4 = vpop.xlane.xlu0 %297 }
  0xf4   : > { %v329_v22 = vmul.f32 0.015625, %v301_v3  ;;  %v328_v23 = vmul.f32 0.015625, %v298_v4  ;;  %v426_v2 = vsel %vm359_vm2, %v425_v48, %v421_v49 }
  0xf6   : > { %v434_v40 = vrot.slane %v329_v22, %v1053_v15  ;;  %v430_v41 = vrot.slane %v328_v23, %v1051_v10 }
  0xf7   : > { %v255_v7 = vpop.xlane.xlu1 %254  ;;  %v252_v8 = vpop.xlane.xlu0 %251 }
  0xf8   : > { %v265_v36 = vmul.f32 0.015625, %v255_v7  ;;  %v264_v37 = vmul.f32 0.015625, %v252_v8  ;;  %v435_v56 = vsel %vm359_vm2, %v434_v40, %v430_v41  ;;  %v398_v7 = vsel %vm397_vm3, %v369_v52, %v360_v55 }
  0xf9   : > { %v473_v8 = vsel %vm472_vm4, %v435_v56, %v426_v2  ;;  %v400_v12 = vsel %vm399_vm5, %v378_v59, %v398_v7 }
  0xfa   : > { %v395_v53 = vrot.slane %v265_v36, %v1053_v15  ;;  %v391_v54 = vrot.slane %v264_v37, %v1051_v10  ;;  %v402_v16 = vsel %vm401_vm7, %v387_v1, %v400_v12 }
  0xfb   : > { %v307_v13 = vpop.xlane.xlu1 %306  ;;  %v304_v14 = vpop.xlane.xlu0 %303 }
  0xfc   : > { %v331_v26 = vmul.f32 0.015625, %v307_v13  ;;  %v330_v27 = vmul.f32 0.015625, %v304_v14  ;;  %v396_v5 = vsel %vm359_vm2, %v395_v53, %v391_v54 }
  0xfd   : > { %v404_v17 = vsel %vm403_vm8, %v396_v5, %v402_v16 }
  0xfe   : > { %v443_v42 = vrot.slane %v331_v26, %v1053_v15  ;;  %v439_v43 = vrot.slane %v330_v27, %v1051_v10 }
  0xff   : > { %v313_v28 = vpop.xlane.xlu1 %312  ;;  %v310_v29 = vpop.xlane.xlu0 %309 }
 0x100   : > { %v333_v44 = vmul.f32 0.015625, %v313_v28  ;;  %v332_v45 = vmul.f32 0.015625, %v310_v29  ;;  %v444_v60 = vsel %vm359_vm2, %v443_v42, %v439_v43 }
 0x101   : > { %v475_v13 = vsel %vm474_vm6, %v444_v60, %v473_v8 }
 0x102   : > { %v452_v61 = vrot.slane %v333_v44, %v1053_v15  ;;  %v448_v62 = vrot.slane %v332_v45, %v1051_v10  ;;  %v481_v20 = vsel %vm480_vm9, %v404_v17, %v475_v13 }
 0x103   : > { %v319_v46 = vpop.xlane.xlu1 %318  ;;  %v316_v47 = vpop.xlane.xlu0 %315 }
 0x104   : > { %v335_v50 = vmul.f32 0.015625, %v319_v46  ;;  %v334_v51 = vmul.f32 0.015625, %v316_v47  ;;  %v453_v14 = vsel %vm359_vm2, %v452_v61, %v448_v62 }
 0x106   : > { %v461_v57 = vrot.slane %v335_v50, %v1053_v15  ;;  %v457_v58 = vrot.slane %v334_v51, %v1051_v10 }
 0x107   : > { %v325_v63 = vpop.xlane.xlu1 %324  ;;  %v322_v0 = vpop.xlane.xlu0 %321 }
 0x108   : > { %v337_v3 = vmul.f32 0.015625, %v325_v63  ;;  %v336_v4 = vmul.f32 0.015625, %v322_v0  ;;  %v462_v6 = vsel %vm359_vm2, %v461_v57, %v457_v58 }
 0x109   : > { %v476_v19 = vsel %vm397_vm3, %v462_v6, %v453_v14 }
 0x10a   : > { %v470_v9 = vrot.slane %v337_v3, %v1053_v15  ;;  %v466_v11 = vrot.slane %v336_v4, %v1051_v10 }
 0x10c   : > { %v471_v18 = vsel %vm359_vm2, %v470_v9, %v466_v11 }
 0x10d   : > { %v477_v15 = vsel %vm399_vm5, %v471_v18, %v476_v19 }
 0x10e   : > { %v482_v10 = vpack.c.bf16 %v477_v15, %v481_v20 }
 0x110   : > { %v485_v21 = vsel %vm483_vm10, %v482_v10, 0 }
 0x111   : > { %690 = vmatpush3.bf16.xpose.msra.mxu0 %v485_v21 }
 0x118   : > { %692 = vmatmul.mubr.msk.bf16.vlgmr.msra.gmra.mrb[0].mxu0 %vm483_vm10, %v482_v10 }
 0x1eb   : > { %v521_v22 = vpop.f32.mrb[0].mxu0 }
 0x1ec   : > { %529 = vst.msk [vmem:[%s203_s23] sm:$0xff] %vm528_vm11, %v521_v22  ;;  %v693_v23 = vpop.f32.mrb[1].mxu0 }
 0x1ed   : > { %v524_v24 = vpop.f32.mrb[2].mxu0 }
 0x1ee   : > { %531 = vst.msk [vmem:[%s203_s23 + $0x8] sm:$0x7] %vm530_vm12, %v524_v24  ;;  %v694_v25 = vpop.f32.mrb[3].mxu0 }
 0x1ef PF: > { %p15_p11 = scmp.ge.s32.totalorder %s892_s14, 4   ;;  %s1124_s9 = smov %s839_s10 }
 0x1f0   : > { %s1125_s10 = smov %s843_s11  ;;  %s1126_s11 = smov %s902_s17 }
 0x1f1   : > { %s1127_s12 = smov %s892_s14  ;;  %17 = sbr.rel (!%p15_p11) target bundleno = 5 (0x5), region = 81 }
 0x1f8   :  { %553 = vsyncpa [#allocation3], 1 }
 0x1f9   :  { %555 = vsyncpa [#allocation3 + $0x1], 1 }
 0x1fa   :  { %556 = vsyncpa [#allocation5], 1 }
 0x1fb   :  { %558 = vsyncpa [#allocation5 + $0x1], 1 }

</bundles_post_ra>
